<compile_context>
chip_gen: v5e
topology: v5e:2x2
jax: 0.10.0
libtpu: 0.0.40
codegen_flags: <defaults>
</compile_context>

<pallas_src>
import functools

import jax
import jax.numpy as jnp
from jax import lax
from jax.experimental import pallas as pl
from jax.experimental.pallas import tpu as pltpu


# ------------------------------ small helpers -------------------------------

def _round_up(x, m):
    return ((x + m - 1) // m) * m


def _lane_pad(c):
    return _round_up(c, 128)


def _largest_divisor_leq(n, cap):
    cap = max(1, min(cap, n))
    for d in range(cap, 0, -1):
        if n % d == 0:
            return d
    return 1


def _vmem_capacity_bytes():
    try:
        info = pltpu.get_tpu_info()
        cap = getattr(info, "vmem_capacity_bytes", None)
        if cap:
            return int(cap)
    except Exception:
        pass
    return 64 << 20                      # conservative fallback (v7x-sized)


def _num_tensorcores():
    try:
        info = pltpu.get_tpu_info()
        for name in ("num_cores", "core_count", "num_tensorcores"):
            v = getattr(info, name, None)
            if v:
                return int(v)
    except Exception:
        pass
    return 1                             # v5e / v6e: the grid is a serial loop


def _vmem_budget_and_limit():
    cap = _vmem_capacity_bytes()
    if cap <= (72 << 20):                # v7x-class (64 MiB per TensorCore)
        return int(cap * 0.55), int(cap * 0.85)
    return int(cap * 0.60), int(cap * 0.85)   # v5e / v6e (128 MiB)


# ------------------------------- Pallas kernel ------------------------------

def _mlp_max_kernel(n_layers, x_ref, *refs):
    """x_ref: [kc, tile_s, C_in] bf16; refs = (W0, shift0, ..., o_ref, acc_ref)."""
    o_ref, acc_ref = refs[-2], refs[-1]
    params = refs[:-2]
    k_step = pl.program_id(2)

    kc, tile_s, cin = x_ref.shape
    # Layout-free merge: tile_s is a multiple of 16 (bf16 sublane pack).
    h = x_ref[...].reshape(kc * tile_s, cin)
    for i in range(n_layers):
        w = params[2 * i][...]                                    # bf16 [Cin_i, Cout_i]
        shift = params[2 * i + 1][...]                            # f32  [1, Cout_i]
        acc = jnp.dot(h, w, preferred_element_type=jnp.float32)   # MXU, f32 accum
        acc = jnp.maximum(acc + shift, 0.0)                       # folded BN shift + ReLU
        h = acc.astype(jnp.bfloat16) if i + 1 < n_layers else acc
    c_out = h.shape[-1]
    m = jnp.max(h.reshape(kc, tile_s, c_out), axis=0)             # VPU max over kc planes

    @pl.when(k_step == 0)
    def _():
        acc_ref[...] = m

    @pl.when(k_step > 0)
    def _():
        acc_ref[...] = jnp.maximum(acc_ref[...], m)

    @pl.when(k_step == pl.num_programs(2) - 1)
    def _():
        o_ref[...] = acc_ref[...].astype(o_ref.dtype)


# ----------------------------- tiling heuristics ----------------------------

def _per_row_bytes(kc, cin, widths_pad):
    """Physical VMEM bytes per tile_s row (lane-padded layouts)."""
    c_out = widths_pad[-1]
    max_w = max(widths_pad)
    return (2 * kc * _lane_pad(cin) * 2      # double-buffered bf16 input block
            + 2 * _lane_pad(c_out) * 4       # double-buffered f32 output block
            + _lane_pad(c_out) * 4           # f32 max-accumulator scratch
            + kc * max_w * 6)                # widest f32 act + bf16 copy of prev act


def _fixed_param_bytes(weights, shifts):
    total = 0
    for w, s in zip(weights, shifts):
        total += 2 * w.shape[0] * w.shape[1] * 2   # bf16 weights, double-buffered
        total += 2 * 8 * s.shape[1] * 4            # f32 [1,C] shift pads to 8 sublanes
    return total


def _choose_tiles(S, B, K, cin, widths_pad, avail_bytes, num_cores):
    """Pick (kc, tile_s): kc divides K; tile_s is a multiple of 16, <= 512."""
    kc = _largest_divisor_leq(K, 16)
    while True:
        per_row = _per_row_bytes(kc, cin, widths_pad)
        raw = avail_bytes // max(per_row, 1)
        fits = raw >= 16
        tile = max(16, min(512, (raw // 16) * 16))
        tile = min(tile, _round_up(S, 16))
        if fits or kc == 1:
            break
        kc = _largest_divisor_leq(K, kc - 1)
    # Multi-TensorCore chips (v7x): aim for >= 2 parallel blocks per core so
    # each core can double-buffer its own input DMAs.  Single-TC chips keep the
    # largest tile the budget allows (the grid is just a serial loop there).
    if num_cores > 1:
        want = 2 * num_cores
        while tile > 16 and B * pl.cdiv(S, tile) < want:
            tile -= 16
    return kc, tile


# ------------------------------ kernel wrapper -------------------------------

def pointnet_mlp_max(x, weights, shifts):
    """x: [B, K, S, C] bf16 -> [B, S, C_last_pad] f32 via shared MLP + max over K."""
    B, K, S, C = x.shape
    cin_pad = weights[0].shape[0]
    widths_pad = [w.shape[1] for w in weights]
    c_out_pad = widths_pad[-1]
    n_layers = len(weights)

    if C < cin_pad:
        x = jnp.pad(x, ((0, 0), (0, 0), (0, 0), (0, cin_pad - C)))

    budget, vmem_limit = _vmem_budget_and_limit()
    num_cores = _num_tensorcores()
    avail = max(budget - _fixed_param_bytes(weights, shifts), 1 << 20)
    kc, tile_s = _choose_tiles(S, B, K, cin_pad, widths_pad, avail, num_cores)

    s_pad = pl.cdiv(S, tile_s) * tile_s
    if s_pad != S:
        x = jnp.pad(x, ((0, 0), (0, 0), (0, s_pad - S), (0, 0)))

    grid = (B, s_pad // tile_s, K // kc)

    in_specs = [pl.BlockSpec((None, kc, tile_s, cin_pad),
                             lambda b, i, k: (b, k, i, 0))]
    args = [x]
    for w, sh in zip(weights, shifts):
        in_specs.append(pl.BlockSpec(w.shape, lambda b, i, k: (0, 0)))
        in_specs.append(pl.BlockSpec(sh.shape, lambda b, i, k: (0, 0)))
        args += [w, sh]

    flops = 2 * B * K * s_pad * sum(w.shape[0] * w.shape[1] for w in weights)
    bytes_accessed = (x.size * x.dtype.itemsize
                      + B * s_pad * c_out_pad * 4
                      + sum(w.size * 2 + sh.size * 4 for w, sh in zip(weights, shifts)))

    out = pl.pallas_call(
        functools.partial(_mlp_max_kernel, n_layers),
        out_shape=jax.ShapeDtypeStruct((B, s_pad, c_out_pad), jnp.float32),
        grid_spec=pltpu.PrefetchScalarGridSpec(
            num_scalar_prefetch=0,
            grid=grid,
            in_specs=in_specs,
            out_specs=pl.BlockSpec((None, tile_s, c_out_pad),
                                   lambda b, i, k: (b, i, 0)),
            scratch_shapes=[pltpu.VMEM((tile_s, c_out_pad), jnp.float32)]),
        compiler_params=pltpu.CompilerParams(
            dimension_semantics=("parallel", "parallel", "arbitrary"),
            vmem_limit_bytes=int(vmem_limit)),
        cost_estimate=pl.CostEstimate(
            flops=int(flops), transcendentals=0,
            bytes_accessed=int(bytes_accessed)),
    )(*args)
    return out[:, :S, :]


# ------------------------- grouping glue (plain JAX) -------------------------

def farthest_point_sample(xyz, npoint):
    """xyz: [B, N, 3] f32 -> [B, npoint] int32."""
    B, N, _ = xyz.shape
    # TODO(synk): torch uses torch.randint for the start index; we start at 0.
    batch_idx = jnp.arange(B)

    def body(i, carry):
        centroids, distance, farthest = carry
        centroids = centroids.at[:, i].set(farthest)
        centroid = xyz[batch_idx, farthest][:, None, :]            # [B,1,3]
        dist = jnp.sum((xyz - centroid) ** 2, axis=-1)
        distance = jnp.minimum(distance, dist)
        farthest = jnp.argmax(distance, axis=-1).astype(jnp.int32)
        return centroids, distance, farthest

    carry0 = (jnp.zeros((B, npoint), jnp.int32),
              jnp.full((B, N), 1e10, jnp.float32),
              jnp.zeros((B,), jnp.int32))
    centroids, _, _ = lax.fori_loop(0, npoint, body, carry0)
    return centroids


def index_points(points, idx):
    """points: [B, N, C]; idx: [B, ...] int -> [B, ..., C].

    Negative indices (pytorch3d ball_query pads with -1) wrap like torch's
    advanced indexing (i.e. -1 -> N-1), matching the literal reference module.
    """
    B, N, C = points.shape
    idx = jnp.where(idx < 0, idx + N, idx)
    flat = idx.reshape(B, -1)
    gathered = jnp.take_along_axis(points, flat[..., None], axis=1)
    return gathered.reshape(*idx.shape, C)


def query_ball_point(radius, nsample, xyz, new_xyz):
    """pytorch3d-style ball_query: first nsample in-ball indices, padded with -1.

    Uses lax.top_k(nsample) on an index key instead of a full sort over N.
    TODO(synk): padded -1 slots wrap to index N-1 downstream (literal spec
    behavior); classic PointNet++ repeats the first in-ball index instead.
    """
    B, N, _ = xyz.shape
    d2 = jnp.sum((new_xyz[:, :, None, :] - xyz[:, None, :, :]) ** 2, axis=-1)
    within = d2 < radius * radius                                  # [B,S,N]
    neg_key = jnp.where(within, -jnp.arange(N, dtype=jnp.int32)[None, None, :], -N)
    topk, _ = lax.top_k(neg_key, nsample)                          # largest = smallest idx
    idx = -topk
    idx = jnp.where(idx >= N, -1, idx)
    return idx.astype(jnp.int32)                                   # [B,S,nsample]


def sample_and_group(npoint, radius, nsample, xyz_f32, points_f32, xyz_bf, points_bf):
    """Returns new_xyz [B,S,3] f32 and grouped features [B, K, S, 3+D] bf16
    (nsample-major so the Pallas kernel can K-chunk nsample via the grid)."""
    fps_idx = farthest_point_sample(xyz_f32, npoint)                # [B,S]
    new_xyz = index_points(xyz_f32, fps_idx)                        # [B,S,3] f32
    idx = query_ball_point(radius, nsample, xyz_f32, new_xyz)       # [B,S,K]
    idx_t = jnp.transpose(idx, (0, 2, 1))                           # [B,K,S]
    grouped_xyz = index_points(xyz_bf, idx_t)                       # [B,K,S,3] bf16
    grouped_xyz_norm = grouped_xyz - new_xyz.astype(jnp.bfloat16)[:, None, :, :]
    if points_bf is not None:
        grouped_points = index_points(points_bf, idx_t)             # [B,K,S,D] bf16
        x = jnp.concatenate([grouped_xyz_norm, grouped_points], axis=-1)
    else:
        x = grouped_xyz_norm
    return new_xyz, x


# ------------------------------ module wrapper -------------------------------

class PointNetSetAbstraction:
    """JAX/Pallas port of the PyTorch PointNetSetAbstraction forward pass."""

    def __init__(self, npoint, radius, nsample, in_channel, mlp, group_all, key):
        self.npoint = npoint
        self.radius = radius
        self.nsample = nsample
        self.group_all = group_all
        self.in_channel = in_channel
        # Input channels padded to a multiple of 8 only (keeps HBM traffic of
        # the grouped tensor low; VMEM lane padding is accounted in the budget).
        self.cin_pad = _round_up(in_channel, 8)
        self.c_last = mlp[-1]

        self.weights, self.shifts = [], []
        last, in_pad = in_channel, self.cin_pad
        eps = 1e-5
        # TODO(synk): BatchNorm2d folded with eval-mode (running) statistics;
        # training-mode batch stats would need a cross-grid reduction.
        for out_c in mlp:
            out_pad = _round_up(out_c, 128)       # lane-dense activations every layer
            key, k1, k2, k3, k4, k5 = jax.random.split(key, 6)
            bound = 1.0 / (last ** 0.5)
            w = jax.random.uniform(k1, (out_c, last), jnp.float32, -bound, bound)
            b = jax.random.uniform(k2, (out_c,), jnp.float32, -bound, bound)
            gamma = 1.0 + 0.1 * jax.random.normal(k3, (out_c,), jnp.float32)
            beta = 0.1 * jax.random.normal(k4, (out_c,), jnp.float32)
            mean = 0.1 * jax.random.normal(k5, (out_c,), jnp.float32)
            var = jnp.ones((out_c,), jnp.float32)
            a = gamma / jnp.sqrt(var + eps)

            w_fold = w.T * a[None, :]                      # [C_in, C_out], BN scale folded
            shift = ((b - mean) * a + beta)[None, :]       # [1, C_out]
            w_fold = jnp.pad(w_fold, ((0, in_pad - last), (0, out_pad - out_c)))
            shift = jnp.pad(shift, ((0, 0), (0, out_pad - out_c)))

            self.weights.append(w_fold.astype(jnp.bfloat16))
            self.shifts.append(shift.astype(jnp.float32))
            last, in_pad = out_c, out_pad

    def __call__(self, xyz, points):
        # xyz: [B, 3, N], points: [B, D, N] or None (PyTorch input layout)
        xyz_t = jnp.transpose(xyz, (0, 2, 1)).astype(jnp.float32)     # [B,N,3]
        pts_t = jnp.transpose(points, (0, 2, 1)) if points is not None else None
        xyz_bf = xyz_t.astype(jnp.bfloat16)
        pts_bf = pts_t.astype(jnp.bfloat16) if pts_t is not None else None

        if self.group_all:
            B = xyz_t.shape[0]
            new_xyz = jnp.zeros((B, 1, 3), jnp.float32)
            grouped = (jnp.concatenate([xyz_bf, pts_bf], axis=-1)
                       if pts_bf is not None else xyz_bf)             # [B,N,3+D]
            # Single query per batch: treat batches as the "query rows" so the
            # same kernel max-reduces over all N points -> x: [1, N, B, C].
            x = jnp.transpose(grouped, (1, 0, 2))[None]
            feat = pointnet_mlp_max(x, self.weights, self.shifts)[0]  # [B, c_out_pad]
            feat = feat[:, :self.c_last][:, None, :]                  # [B, 1, c_last]
        else:
            new_xyz, x = sample_and_group(self.npoint, self.radius, self.nsample,
                                          xyz_t, pts_t, xyz_bf, pts_bf)
            feat = pointnet_mlp_max(x, self.weights, self.shifts)     # [B,S,c_out_pad]
            feat = feat[:, :, :self.c_last]                           # [B,S,c_last]

        feat = jnp.transpose(feat, (0, 2, 1))            # [B, D', S]
        new_xyz = jnp.transpose(new_xyz, (0, 2, 1))      # [B, 3, S]
        return new_xyz, feat


# ----------------------------------- demo ------------------------------------

if __name__ == "__main__":
    key = jax.random.PRNGKey(0)
    k_xyz, k_pts, k_p1, k_p2 = jax.random.split(key, 4)

    B, N, D = 2, 32, 4
    npoint, radius, nsample = 8, 1.0, 8
    mlp = [16, 32]

    xyz = 0.5 * jax.random.normal(k_xyz, (B, 3, N), jnp.float32)
    points = jax.random.normal(k_pts, (B, D, N), jnp.float32)

    sa = PointNetSetAbstraction(npoint, radius, nsample, in_channel=3 + D,
                                mlp=mlp, group_all=False, key=k_p1)
    new_xyz, new_feat = sa(xyz, points)
    jax.block_until_ready((new_xyz, new_feat))
    assert new_xyz.shape == (B, 3, npoint), new_xyz.shape
    assert new_feat.shape == (B, mlp[-1], npoint), new_feat.shape
    assert bool(jnp.all(jnp.isfinite(new_feat)))

    # group_all path (single query per batch; exercises the K-chunk accumulator)
    sa_all = PointNetSetAbstraction(None, None, None, in_channel=3 + D,
                                    mlp=mlp, group_all=True, key=k_p2)
    ga_xyz, ga_feat = sa_all(xyz, points)
    jax.block_until_ready((ga_xyz, ga_feat))
    assert ga_xyz.shape == (B, 3, 1), ga_xyz.shape
    assert ga_feat.shape == (B, mlp[-1], 1), ga_feat.shape
    assert bool(jnp.all(jnp.isfinite(ga_feat)))

    print("KERNEL_OK")
</pallas_src>

<mosaic_0001>
module attributes {stable_mosaic.version = 11 : i64} {
  func.func @_mlp_max_kernel(%arg0: i32, %arg1: i32, %arg2: i32, %arg3: memref<1x8x16x8xbf16, #tpu.memory_space<vmem>>, %arg4: memref<8x128xbf16, #tpu.memory_space<vmem>>, %arg5: memref<1x128xf32, #tpu.memory_space<vmem>>, %arg6: memref<128x128xbf16, #tpu.memory_space<vmem>>, %arg7: memref<1x128xf32, #tpu.memory_space<vmem>>, %arg8: memref<1x16x128xf32, #tpu.memory_space<vmem>>, %arg9: memref<16x128xf32, #tpu.memory_space<vmem>>) attributes {dimension_semantics = [#tpu.dimension_semantics<parallel>, #tpu.dimension_semantics<parallel>, #tpu.dimension_semantics<arbitrary>], iteration_bounds = array<i64: 2, 1, 1>, scalar_prefetch = 0 : i64, scratch_operands = 1 : i64, tpu.core_type = #tpu.core_type<tc>, window_params = [{transform_indices = @transform_0, window_bounds = array<i64: 1, 8, 16, 8>}, {pipeline_mode = #tpu.pipeline_mode<synchronous>, transform_indices = @transform_1, window_bounds = array<i64: 8, 128>}, {pipeline_mode = #tpu.pipeline_mode<synchronous>, transform_indices = @transform_2, window_bounds = array<i64: 1, 128>}, {pipeline_mode = #tpu.pipeline_mode<synchronous>, transform_indices = @transform_3, window_bounds = array<i64: 128, 128>}, {pipeline_mode = #tpu.pipeline_mode<synchronous>, transform_indices = @transform_4, window_bounds = array<i64: 1, 128>}, {transform_indices = @transform_5, window_bounds = array<i64: 1, 16, 128>}]} {
    %c0 = arith.constant 0 : index
    %c0_0 = arith.constant 0 : index
    %c0_1 = arith.constant 0 : index
    %c0_2 = arith.constant 0 : index
    %0 = vector.load %arg3[%c0, %c0_0, %c0_1, %c0_2] : memref<1x8x16x8xbf16, #tpu.memory_space<vmem>>, vector<1x8x16x8xbf16>
    %1 = vector.shape_cast %0 : vector<1x8x16x8xbf16> to vector<8x16x8xbf16>
    %2 = vector.shape_cast %1 : vector<8x16x8xbf16> to vector<128x8xbf16>
    %c0_3 = arith.constant 0 : index
    %c0_4 = arith.constant 0 : index
    %3 = vector.load %arg4[%c0_3, %c0_4] : memref<8x128xbf16, #tpu.memory_space<vmem>>, vector<8x128xbf16>
    %c0_5 = arith.constant 0 : index
    %c0_6 = arith.constant 0 : index
    %4 = vector.load %arg5[%c0_5, %c0_6] : memref<1x128xf32, #tpu.memory_space<vmem>>, vector<1x128xf32>
    %cst = arith.constant dense<0.000000e+00> : vector<128x128xf32>
    %5 = tpu.matmul %2, %3, %cst {dimension_numbers = #tpu.dot_dimension_numbers<[1], [0], [0], [1], [0, 0, 1, 1], [], []>} : vector<128x8xbf16>, vector<8x128xbf16>, vector<128x128xf32> -> vector<128x128xf32>
    %6 = vector.broadcast %4 : vector<1x128xf32> to vector<128x128xf32>
    %7 = arith.addf %5, %6 : vector<128x128xf32>
    %cst_7 = arith.constant 0.000000e+00 : f32
    %8 = vector.broadcast %cst_7 : f32 to vector<128x128xf32>
    %9 = arith.maximumf %7, %8 : vector<128x128xf32>
    %10 = arith.truncf %9 : vector<128x128xf32> to vector<128x128xbf16>
    %c0_8 = arith.constant 0 : index
    %c0_9 = arith.constant 0 : index
    %11 = vector.load %arg6[%c0_8, %c0_9] : memref<128x128xbf16, #tpu.memory_space<vmem>>, vector<128x128xbf16>
    %c0_10 = arith.constant 0 : index
    %c0_11 = arith.constant 0 : index
    %12 = vector.load %arg7[%c0_10, %c0_11] : memref<1x128xf32, #tpu.memory_space<vmem>>, vector<1x128xf32>
    %cst_12 = arith.constant dense<0.000000e+00> : vector<128x128xf32>
    %13 = tpu.matmul %10, %11, %cst_12 {dimension_numbers = #tpu.dot_dimension_numbers<[1], [0], [0], [1], [0, 0, 1, 1], [], []>} : vector<128x128xbf16>, vector<128x128xbf16>, vector<128x128xf32> -> vector<128x128xf32>
    %14 = vector.broadcast %12 : vector<1x128xf32> to vector<128x128xf32>
    %15 = arith.addf %13, %14 : vector<128x128xf32>
    %cst_13 = arith.constant 0.000000e+00 : f32
    %16 = vector.broadcast %cst_13 : f32 to vector<128x128xf32>
    %17 = arith.maximumf %15, %16 : vector<128x128xf32>
    %18 = vector.shape_cast %17 : vector<128x128xf32> to vector<8x16x128xf32>
    %cst_14 = arith.constant dense<0xFF800000> : vector<16x128xf32>
    %19 = vector.multi_reduction <maximumf>, %18, %cst_14 [0] : vector<8x16x128xf32> to vector<16x128xf32>
    %c0_i32 = arith.constant 0 : i32
    %20 = arith.cmpi eq, %arg2, %c0_i32 : i32
    %21 = arith.extui %20 : i1 to i32
    %c0_i32_15 = arith.constant 0 : i32
    %22 = arith.cmpi ne, %21, %c0_i32_15 : i32
    scf.if %22 {
      %c0_20 = arith.constant 0 : index
      %c0_21 = arith.constant 0 : index
      %29 = vector.load %arg9[%c0_20, %c0_21] : memref<16x128xf32, #tpu.memory_space<vmem>>, vector<16x128xf32>
      tpu.vector_store %arg9[%c0_20, %c0_21], %19 {strides = array<i32>} : memref<16x128xf32, #tpu.memory_space<vmem>>, vector<16x128xf32>,
    } else {
    }
    %c0_i32_16 = arith.constant 0 : i32
    %23 = arith.cmpi sgt, %arg2, %c0_i32_16 : i32
    %24 = arith.extui %23 : i1 to i32
    %c0_i32_17 = arith.constant 0 : i32
    %25 = arith.cmpi ne, %24, %c0_i32_17 : i32
    scf.if %25 {
      %c0_20 = arith.constant 0 : index
      %c0_21 = arith.constant 0 : index
      %29 = vector.load %arg9[%c0_20, %c0_21] : memref<16x128xf32, #tpu.memory_space<vmem>>, vector<16x128xf32>
      %30 = arith.maximumf %29, %19 : vector<16x128xf32>
      %c0_22 = arith.constant 0 : index
      %c0_23 = arith.constant 0 : index
      %31 = vector.load %arg9[%c0_22, %c0_23] : memref<16x128xf32, #tpu.memory_space<vmem>>, vector<16x128xf32>
      tpu.vector_store %arg9[%c0_22, %c0_23], %30 {strides = array<i32>} : memref<16x128xf32, #tpu.memory_space<vmem>>, vector<16x128xf32>,
    } else {
    }
    %c0_i32_18 = arith.constant 0 : i32
    %26 = arith.cmpi eq, %arg2, %c0_i32_18 : i32
    %27 = arith.extui %26 : i1 to i32
    %c0_i32_19 = arith.constant 0 : i32
    %28 = arith.cmpi ne, %27, %c0_i32_19 : i32
    scf.if %28 {
      %c0_20 = arith.constant 0 : index
      %c0_21 = arith.constant 0 : index
      %29 = vector.load %arg9[%c0_20, %c0_21] : memref<16x128xf32, #tpu.memory_space<vmem>>, vector<16x128xf32>
      %c0_22 = arith.constant 0 : index
      %c0_23 = arith.constant 0 : index
      %c0_24 = arith.constant 0 : index
      %30 = vector.load %arg8[%c0_22, %c0_23, %c0_24] : memref<1x16x128xf32, #tpu.memory_space<vmem>>, vector<1x16x128xf32>
      %31 = vector.shape_cast %30 : vector<1x16x128xf32> to vector<16x128xf32>
      %32 = vector.shape_cast %29 : vector<16x128xf32> to vector<1x16x128xf32>
      tpu.vector_store %arg8[%c0_22, %c0_23, %c0_24], %32 {strides = array<i32>} : memref<1x16x128xf32, #tpu.memory_space<vmem>>, vector<1x16x128xf32>,
    } else {
    }
    return
  }
  func.func @transform_0(%arg0: i32, %arg1: i32, %arg2: i32) -> (i32, i32, i32, i32) {
    %c0_i32 = arith.constant 0 : i32
    %c0_i32_0 = arith.constant 0 : i32
    return %arg0, %arg2, %arg1, %c0_i32 : i32, i32, i32, i32
  }
  func.func @transform_1(%arg0: i32, %arg1: i32, %arg2: i32) -> (i32, i32) {
    %c0_i32 = arith.constant 0 : i32
    %c0_i32_0 = arith.constant 0 : i32
    %c0_i32_1 = arith.constant 0 : i32
    return %c0_i32, %c0_i32_0 : i32, i32
  }
  func.func @transform_2(%arg0: i32, %arg1: i32, %arg2: i32) -> (i32, i32) {
    %c0_i32 = arith.constant 0 : i32
    %c0_i32_0 = arith.constant 0 : i32
    %c0_i32_1 = arith.constant 0 : i32
    return %c0_i32, %c0_i32_0 : i32, i32
  }
  func.func @transform_3(%arg0: i32, %arg1: i32, %arg2: i32) -> (i32, i32) {
    %c0_i32 = arith.constant 0 : i32
    %c0_i32_0 = arith.constant 0 : i32
    %c0_i32_1 = arith.constant 0 : i32
    return %c0_i32, %c0_i32_0 : i32, i32
  }
  func.func @transform_4(%arg0: i32, %arg1: i32, %arg2: i32) -> (i32, i32) {
    %c0_i32 = arith.constant 0 : i32
    %c0_i32_0 = arith.constant 0 : i32
    %c0_i32_1 = arith.constant 0 : i32
    return %c0_i32, %c0_i32_0 : i32, i32
  }
  func.func @transform_5(%arg0: i32, %arg1: i32, %arg2: i32) -> (i32, i32, i32) {
    %c0_i32 = arith.constant 0 : i32
    %c0_i32_0 = arith.constant 0 : i32
    return %arg0, %arg1, %c0_i32 : i32, i32, i32
  }
}

</mosaic_0001>

<bundles_post_ra>
// kernel: tpu_custom_call.1
= control target key start
LH: loop header
LB: loop body
LE: loop exit
PB: predicated region body
PF: predicated region fallthrough
CT: control target
= control target key end

     0   :  { %10 = vsyncpa [#allocation4], 0  ;;  %s1145_s0 = inlined_call_operand.vmem [shape: bf16[2,8,16,8], index: 0, kind: input, shape index: {}]   ;;  %s1146_s1 = inlined_call_operand.vmem [shape: bf16[8,128], index: 1, kind: input, shape index: {}]   ;;  %s1147_s2 = inlined_call_operand.vmem [shape: f32[1,128], index: 2, kind: input, shape index: {}]   ;;  %s1148_s3 = inlined_call_operand.vmem [shape: bf16[128,128], index: 3, kind: input, shape index: {}]   ;;  %s1149_s4 = inlined_call_operand.vmem [shape: f32[1,128], index: 4, kind: input, shape index: {}]   ;;  %s1150_s5 = inlined_call_operand.hbm [shape: f32[2,16,128], index: 5, kind: output, shape index: {}]  }
   0x1   :  { %12 = vsyncpa [#allocation4 + $0x1], 0  ;;  %s1003_s18 = smov 0   ;;  %s1005_s19 = smov 0  }
   0x2   :  { %s1007_s20 = smov 0   ;;  %s1009_s21 = smov 0  }
   0x3   :  { %s1011_s22 = smov 0   ;;  %s1013_s23 = smov 0  }
   0x4 LB: > { %s720_s24 = sadd.s32 4294967295, %s969_s23   ;;  %s721_s25 = sadd.s32 4294967294, %s969_s23   ;;  %s969_s23 = sphi %s1013_s23, %s18_s23   ;;  %s965_s22 = sphi %s1011_s22, %s1157_s22   ;;  %s961_s21 = sphi %s1009_s21, %s1156_s21   ;;  %s957_s20 = sphi %s1007_s20, %s1155_s20   ;;  %s953_s19 = sphi %s1005_s19, %s1154_s19   ;;  %s949_s18 = sphi %s1003_s18, %s1153_s18  }
   0x5   : > { %s37_s26 = sadd.s32 1, %s965_s22  ;;  %s160_s27 = sadd.s32 1, %s957_s20 }
   0x6   : > { %p39_p0 = scmp.ge.s32.totalorder %s37_s26, 2  ;;  %p170_p1 = scmp.ne.s32.totalorder %s957_s20, %s953_s19 }
   0x7   : > { %p171_p2 = scmp.eq.s32.totalorder %s720_s24, 1  ;;  %p176_p3 = scmp.ne.s32.totalorder %s953_s19, %s949_s18 }
   0x8   : > { %s1159_s26 = smov (%p39_p0, %s37_s26), 0  ;;  %p177_p5 = scmp.eq.s32.totalorder %s721_s25, 1 }
   0x9   : > { %p1043_p4 = por %p171_p2, %p170_p1  ;;  %s155_s29 = ssub.s32 %s965_s22, %s1159_s26 }
   0xa   : > { %p724_p6 = scmp.ge.s32.totalorder %s969_s23, 1  ;;  %p158_p7 = scmp.eq.s32.totalorder %s155_s29, 0 }
   0xb   : > { %p1050_p8 = por %p177_p5, %p176_p3  ;;  %p226_p9 = scmp.lt.s32.totalorder %s969_s23, 3 }
   0xc   : > { %s1056_s6 = scalar_select %p158_p7, %s957_s20, %s160_s27  }
   0xd   : > { %p227_p10 = pnand %p724_p6, %p226_p9 }
   0xe   : > { %p265_p11 = scmp.lt.s32.totalorder (!%p227_p10), %s961_s21, 1  ;;  %s260_s25 = sand.u32 (!%p227_p10), 1, %s953_s19  }
   0xf   : > { %230 = sbr.rel (%p227_p10) target bundleno = 429 (0x1ad), region = 40  ;;  %s725_s27 = sshll.u32 (!%p227_p10), %s260_s25, 4 }
  0x10   : > { %s822_s29 = sshll.u32 (!%p227_p10), %s961_s21, 4  ;;  %s615_s12 = scalar_lea.sflag (!%p227_p10), [#allocation4], %s260_s25 }
  0x11   : > { %s911_s17 = scalar_lea.hbm (!%p227_p10), %s1150_s5, 32 }
  0x14   : > { %v297_v0 = vld [vmem:[%s1146_s1] sm:$0xf]  ;;  %vm367_vm0 = vcmask 1043456   ;;  %s266_s9 = scalar_select %p265_p11, %s961_s21, 1  ;;  %vm342_vm1 = vcmask 64512   ;;  %v821_v6 = vld [vmem:[%s1148_s3 + $0x38] sm:$0xff] }
  0x15   : > { %v369_v1 = vsel %vm367_vm0, %v297_v0, 0  ;;  %512 = vmatpush.bf16.msra.mxu1 %v821_v6  ;;  %v820_v7 = vld [vmem:[%s1148_s3 + $0x30] sm:$0xff]  ;;  %824 = vmatpush.bf16.msra.mxu2 %v821_v6  ;;  %v819_v8 = vld [vmem:[%s1148_s3 + $0x28] sm:$0xff]  ;;  %v818_v10 = vld [vmem:[%s1148_s3 + $0x20] sm:$0xff] }
  0x16   : > { %378 = vmatpush.bf16.msra.mxu0 %v369_v1  ;;  %823 = vmatpush.bf16.msra.mxu3 %v369_v1  ;;  %s805_s10 = sshll.u32 %s266_s9, 6  ;;  %v817_v14 = vld [vmem:[%s1148_s3 + $0x18] sm:$0xff]  ;;  %v816_v15 = vld [vmem:[%s1148_s3 + $0x10] sm:$0xff]  ;;  %v815_v16 = vld [vmem:[%s1148_s3 + $0x8] sm:$0xff]  ;;  %s628_s9 = scalar_lea.hbm %s1150_s5, %s822_s29 }
  0x17   : > { %s276_s13 = scalar_lea.vmem %s1145_s0, %s805_s10  ;;  %v814_v17 = vld [vmem:[%s1148_s3] sm:$0xff]  ;;  %s262_s10 = scalar_lea.vmem [#allocation3], %s725_s27 }
  0x18   : > { %v806_v2 = vld [vmem:[%s276_s13] sm:$0xff]  ;;  %v807_v3 = vld [vmem:[%s276_s13 + $0x8] sm:$0xff]  ;;  %v808_v4 = vld [vmem:[%s276_s13 + $0x10] sm:$0xff]  ;;  %s629_s21 = sshll.u32 %s262_s10, 4  ;;  %s631_s11 = sshll.u32 %s628_s9, 4  ;;  %s630_s21 = int_to_ptr.vmem [resolvable:$true] %s629_s21  ;;  %s632_s11 = int_to_ptr.hbm [resolvable:$true] %s631_s11 }
  0x19   : > { %760 = vmatmul.msk.bf16.vlgmr.msra.gmra.mxu0 %vm342_vm1, %v806_v2  ;;  %v811_v5 = vld [vmem:[%s276_s13 + $0x28] sm:$0xff]  ;;  %513 = vmatpush.bf16.msra.mxu1 %v820_v7  ;;  %v809_v9 = vld [vmem:[%s276_s13 + $0x18] sm:$0xff]  ;;  %v812_v11 = vld [vmem:[%s276_s13 + $0x30] sm:$0xff] }
  0x1a   : > { %765 = vmatmul.msk.bf16.vlgmr.msra.gmra.mxu3 %vm342_vm1, %v811_v5  ;;  %825 = vmatpush.bf16.msra.mxu2 %v820_v7  ;;  %v810_v12 = vld [vmem:[%s276_s13 + $0x20] sm:$0xff]  ;;  %v813_v13 = vld [vmem:[%s276_s13 + $0x38] sm:$0xff]  ;;  %s905_s13 = sshra.s32 %s632_s11, 4  ;;  %s906_s13 = int_to_ptr.hbm [resolvable:$true] %s905_s13 }
  0x1b   : > { %v889_v19 = vld [vmem:[%s1147_s2] ss:$0 sm:$0xff]  ;;  %s907_s14 = scalar_lea.hbm %s906_s13, 16  ;;  %p912_p1 = scmp.lt.s32.totalorder %s906_s13, %s1150_s5 }
  0x1c   : > { %p908_p12 = scmp.ne.s32.totalorder %s906_s13, %s907_s14  ;;  %p913_p2 = scmp.lt.s32.totalorder %s911_s17, %s907_s14 }
  0x1d   : > { %514 = vmatpush.bf16.msra.mxu1 %v819_v8 }
  0x1e   : > { %826 = vmatpush.bf16.msra.mxu2 %v819_v8  ;;  %p909_p13 = pnand %p908_p12, %p1043_p4  ;;  %p914_p3 = por %p913_p2, %p912_p1 }
  0x20   : > { %p910_p0 = pneg %p909_p13 }
  0x21   : > { %515 = vmatpush.bf16.msra.mxu1 %v818_v10 }
  0x22   : > { %827 = vmatpush.bf16.msra.mxu2 %v818_v10  ;;  %p915_p5 = pnand %p914_p3, %p910_p0 }
  0x25   : > { %516 = vmatpush.bf16.msra.mxu1 %v817_v14 }
  0x26   : > { %828 = vmatpush.bf16.msra.mxu2 %v817_v14 }
  0x29   : > { %761 = vmatmul.msk.bf16.gmra.mxu0 %vm342_vm1, %v807_v3  ;;  %517 = vmatpush.bf16.msra.mxu1 %v816_v15 }
  0x2a   : > { %766 = vmatmul.msk.bf16.gmra.mxu3 %vm342_vm1, %v812_v11  ;;  %829 = vmatpush.bf16.msra.mxu2 %v816_v15 }
  0x2d   : > { %518 = vmatpush.bf16.msra.mxu1 %v815_v16 }
  0x2e   : > { %830 = vmatpush.bf16.msra.mxu2 %v815_v16 }
  0x31   : > { %519 = vmatpush.bf16.msra.mxu1 %v814_v17 }
  0x32   : > { %831 = vmatpush.bf16.msra.mxu2 %v814_v17 }
  0x39   : > { %762 = vmatmul.msk.bf16.gmra.mxu0 %vm342_vm1, %v808_v4 }
  0x3a   : > { %767 = vmatmul.msk.bf16.gmra.mxu3 %vm342_vm1, %v813_v13 }
  0x49   : > { %763 = vmatmul.msk.bf16.gmra.mxu0 %vm342_vm1, %v809_v9 }
  0x59   : > { %764 = vmatmul.msk.bf16.gmra.mxu0 %vm342_vm1, %v810_v12 }
  0x96   : > { %v380_v18 = vpop.f32.mrf.mxu0 }
  0x97   : > { %v381_v20 = vadd.f32 %v889_v19, %v380_v18 }
  0x99   : > { %v420_v23 = vmax.f32 %v381_v20, 0.0 }
  0x9d   : > { %v405_v48 = vpop.f32.mrf.mxu3 }
  0x9e   : > { %v382_v21 = vpop.f32.mrf.mxu0  ;;  %v406_v57 = vadd.f32 %v889_v19, %v405_v48 }
  0x9f   : > { %v383_v22 = vadd.f32 %v889_v19, %v382_v21 }
  0xa0   : > { %v430_v59 = vmax.f32 %v406_v57, 0.0 }
  0xa1   : > { %v421_v24 = vmax.f32 %v383_v22, 0.0 }
  0xa3   : > { %v436_v25 = vpack.c.bf16 %v421_v24, %v420_v23 }
  0xa5   : > { %520 = vmatmul.bf16.vlgmr.msra.gmra.mxu1 %v436_v25  ;;  %v407_v52 = vpop.f32.mrf.mxu3 }
  0xa6   : > { %v385_v26 = vpop.f32.mrf.mxu0  ;;  %v408_v58 = vadd.f32 %v889_v19, %v407_v52 }
  0xa7   : > { %v386_v27 = vadd.f32 %v889_v19, %v385_v26 }
  0xa8   : > { %v431_v60 = vmax.f32 %v408_v58, 0.0 }
  0xa9   : > { %v422_v30 = vmax.f32 %v386_v27, 0.0 }
  0xaa   : > { %v441_v61 = vpack.c.bf16 %v431_v60, %v430_v59 }
  0xad   : > { %v410_v56 = vpop.f32.mrf.mxu3 }
  0xae   : > { %v387_v28 = vpop.f32.mrf.mxu0  ;;  %v411_v63 = vadd.f32 %v889_v19, %v410_v56 }
  0xaf   : > { %v388_v29 = vadd.f32 %v889_v19, %v387_v28 }
  0xb0   : > { %v432_v2 = vmax.f32 %v411_v63, 0.0 }
  0xb1   : > { %v423_v31 = vmax.f32 %v388_v29, 0.0 }
  0xb3   : > { %v437_v32 = vpack.c.bf16 %v423_v31, %v422_v30 }
  0xb5   : > { %525 = vmatmul.bf16.gmra.mxu1 %v437_v32  ;;  %v412_v62 = vpop.f32.mrf.mxu3 }
  0xb6   : > { %v390_v33 = vpop.f32.mrf.mxu0  ;;  %v413_v0 = vadd.f32 %v889_v19, %v412_v62 }
  0xb7   : > { %v391_v34 = vadd.f32 %v889_v19, %v390_v33 }
  0xb8   : > { %v433_v3 = vmax.f32 %v413_v0, 0.0 }
  0xb9   : > { %v424_v37 = vmax.f32 %v391_v34, 0.0 }
  0xba   : > { %v442_v4 = vpack.c.bf16 %v433_v3, %v432_v2 }
  0xbd   : > { %v415_v1 = vpop.f32.mrf.mxu3 }
  0xbe   : > { %v392_v35 = vpop.f32.mrf.mxu0  ;;  %v416_v6 = vadd.f32 %v889_v19, %v415_v1 }
  0xbf   : > { %v393_v36 = vadd.f32 %v889_v19, %v392_v35 }
  0xc0   : > { %v434_v8 = vmax.f32 %v416_v6, 0.0 }
  0xc1   : > { %v425_v38 = vmax.f32 %v393_v36, 0.0 }
  0xc3   : > { %v438_v39 = vpack.c.bf16 %v425_v38, %v424_v37 }
  0xc5   : > { %530 = vmatmul.bf16.gmra.mxu1 %v438_v39  ;;  %v417_v5 = vpop.f32.mrf.mxu3 }
  0xc6   : > { %v395_v40 = vpop.f32.mrf.mxu0  ;;  %v418_v7 = vadd.f32 %v889_v19, %v417_v5 }
  0xc7   : > { %v396_v41 = vadd.f32 %v889_v19, %v395_v40 }
  0xc8   : > { %v435_v9 = vmax.f32 %v418_v7, 0.0 }
  0xc9   : > { %v426_v44 = vmax.f32 %v396_v41, 0.0 }
  0xca   : > { %v443_v10 = vpack.c.bf16 %v435_v9, %v434_v8 }
  0xce   : > { %v397_v42 = vpop.f32.mrf.mxu0 }
  0xcf   : > { %v398_v43 = vadd.f32 %v889_v19, %v397_v42 }
  0xd1   : > { %v427_v45 = vmax.f32 %v398_v43, 0.0 }
  0xd3   : > { %v439_v46 = vpack.c.bf16 %v427_v45, %v426_v44 }
  0xd5   : > { %535 = vmatmul.bf16.gmra.mxu1 %v439_v46 }
  0xd6   : > { %v400_v47 = vpop.f32.mrf.mxu0 }
  0xd7   : > { %v401_v49 = vadd.f32 %v889_v19, %v400_v47 }
  0xd9   : > { %v428_v53 = vmax.f32 %v401_v49, 0.0 }
  0xde   : > { %v402_v50 = vpop.f32.mrf.mxu0 }
  0xdf   : > { %v403_v51 = vadd.f32 %v889_v19, %v402_v50  ;;  %v890_v19 = vld [vmem:[%s1149_s4] ss:$0 sm:$0xff] }
  0xe1   : > { %v429_v54 = vmax.f32 %v403_v51, 0.0 }
  0xe3   : > { %v440_v55 = vpack.c.bf16 %v429_v54, %v428_v53 }
  0xe5   : > { %540 = vmatmul.bf16.vlgmr.msra.gmra.mxu2 %v440_v55 }
  0xf5   : > { %545 = vmatmul.bf16.gmra.mxu2 %v441_v61 }
 0x105   : > { %550 = vmatmul.bf16.gmra.mxu2 %v442_v4 }
 0x115   : > { %555 = vmatmul.bf16.gmra.mxu2 %v443_v10 }
 0x122   : > { %v521_v11 = vpop.f32.mrf.mxu1 }
 0x123   : > { %v522_v27 = vadd.f32 %v890_v19, %v521_v11 }
 0x125   : > { %v561_v34 = vmax.f32 %v522_v27, 0.0 }
 0x12a   : > { %v523_v12 = vpop.f32.mrf.mxu1 }
 0x12b   : > { %v524_v46 = vadd.f32 %v890_v19, %v523_v12 }
 0x12d   : > { %v562_v58 = vmax.f32 %v524_v46, 0.0 }
 0x132   : > { %v526_v13 = vpop.f32.mrf.mxu1 }
 0x133   : > { %v527_v29 = vadd.f32 %v890_v19, %v526_v13 }
 0x135   : > { %v563_v37 = vmax.f32 %v527_v29, 0.0 }
 0x13a   : > { %v528_v15 = vpop.f32.mrf.mxu1 }
 0x13b   : > { %v529_v47 = vadd.f32 %v890_v19, %v528_v15 }
 0x13d   : > { %v564_v59 = vmax.f32 %v529_v47, 0.0 }
 0x142   : > { %v531_v17 = vpop.f32.mrf.mxu1 }
 0x143   : > { %v532_v24 = vadd.f32 %v890_v19, %v531_v17 }
 0x145   : > { %v565_v31 = vmax.f32 %v532_v24, 0.0 }
 0x147   : > { %v577_v39 = vmax.f32 %v561_v34, %v565_v31 }
 0x14a   : > { %v533_v21 = vpop.f32.mrf.mxu1 }
 0x14b   : > { %v534_v40 = vadd.f32 %v890_v19, %v533_v21 }
 0x14d   : > { %v566_v53 = vmax.f32 %v534_v40, 0.0 }
 0x14f   : > { %v584_v0 = vmax.f32 %v562_v58, %v566_v53 }
 0x152   : > { %v536_v23 = vpop.f32.mrf.mxu1 }
 0x153   : > { %v537_v26 = vadd.f32 %v890_v19, %v536_v23 }
 0x155   : > { %v567_v32 = vmax.f32 %v537_v26, 0.0 }
 0x157   : > { %v578_v42 = vmax.f32 %v563_v37, %v567_v32 }
 0x15a   : > { %v538_v35 = vpop.f32.mrf.mxu1 }
 0x15b   : > { %v539_v43 = vadd.f32 %v890_v19, %v538_v35 }
 0x15d   : > { %v568_v54 = vmax.f32 %v539_v43, 0.0 }
 0x15f   : > { %v585_v1 = vmax.f32 %v564_v59, %v568_v54 }
 0x168   : > { %v541_v14 = vpop.f32.mrf.mxu2 }
 0x169   : > { %v542_v28 = vadd.f32 %v890_v19, %v541_v14 }
 0x16b   : > { %v569_v36 = vmax.f32 %v542_v28, 0.0 }
 0x16d   : > { %v579_v48 = vmax.f32 %v577_v39, %v569_v36 }
 0x170   : > { %v543_v16 = vpop.f32.mrf.mxu2 }
 0x171   : > { %v544_v49 = vadd.f32 %v890_v19, %v543_v16 }
 0x173   : > { %v570_v60 = vmax.f32 %v544_v49, 0.0 }
 0x175   : > { %v586_v4 = vmax.f32 %v584_v0, %v570_v60 }
 0x178   : > { %v546_v18 = vpop.f32.mrf.mxu2 }
 0x179   : > { %v547_v30 = vadd.f32 %v890_v19, %v546_v18 }
 0x17b   : > { %v571_v38 = vmax.f32 %v547_v30, 0.0 }
 0x17d   : > { %v580_v50 = vmax.f32 %v578_v42, %v571_v38 }
 0x180   : > { %v548_v20 = vpop.f32.mrf.mxu2 }
 0x181   : > { %v549_v51 = vadd.f32 %v890_v19, %v548_v20 }
 0x183   : > { %v572_v61 = vmax.f32 %v549_v51, 0.0 }
 0x185   : > { %v587_v5 = vmax.f32 %v585_v1, %v572_v61 }
 0x188   : > { %v551_v22 = vpop.f32.mrf.mxu2 }
 0x189   : > { %v552_v33 = vadd.f32 %v890_v19, %v551_v22 }
 0x18b   : > { %v573_v44 = vmax.f32 %v552_v33, 0.0 }
 0x18d   : > { %v581_v55 = vmax.f32 %v579_v48, %v573_v44 }
 0x190   : > { %v553_v25 = vpop.f32.mrf.mxu2 }
 0x191   : > { %v554_v56 = vadd.f32 %v890_v19, %v553_v25 }
 0x193   : > { %v574_v2 = vmax.f32 %v554_v56, 0.0 }
 0x195   : > { %v588_v7 = vmax.f32 %v586_v4, %v574_v2 }
 0x198   : > { %v556_v41 = vpop.f32.mrf.mxu2 }
 0x199   : > { %v557_v45 = vadd.f32 %v890_v19, %v556_v41 }
 0x19b   : > { %v575_v52 = vmax.f32 %v557_v45, 0.0 }
 0x19d   : > { %v582_v57 = vmax.f32 %v580_v50, %v575_v52 }
 0x19f   : > { %v583_v62 = vmax.f32 %v581_v55, %v582_v57 }
 0x1a0   : > { %v558_v63 = vpop.f32.mrf.mxu2 }
 0x1a1   : > { %612 = vst [vmem:[%s262_s10] sm:$0xff] %v583_v62  ;;  %v559_v3 = vadd.f32 %v890_v19, %v558_v63 }
 0x1a3   : > { %v576_v6 = vmax.f32 %v559_v3, 0.0 }
 0x1a5   : > { %v589_v8 = vmax.f32 %v587_v5, %v576_v6 }
 0x1a7   : > { %v590_v9 = vmax.f32 %v588_v7, %v589_v8 }
 0x1a9   : > { %613 = vst [vmem:[%s262_s10 + $0x8] sm:$0xff] %v590_v9 }
 0x1aa   : > { %918 = shalt.err (!%p915_p5)
}
 0x1ab   : > { %s971_s25 = smov 128   ;;  %s972_s29 = smov 8  }
 0x1ac   : > { %832 = dma.vmem_to_hbm [thread:$0]  (%p1043_p4), %s630_s21, 256, %s632_s11, %s615_s12, %s971_s25, %s971_s25, %s972_s29  }
 0x1ad PF: > { %p838_p6 = scmp.ge.s32.totalorder %s969_s23, 2  ;;  %s646_s7 = sand.u32 1, %s949_s18  }
 0x1ae   : > { %s647_s8 = scalar_lea.sflag [#allocation4], %s646_s7 }
 0x1af   : > { %p835_p7 = pnand %p838_p6, %p1050_p8 }
 0x1b1   : > { %p836_p9 = pneg %p835_p7 }
 0x1b3   : > { %944 = dma.done.wait (%p836_p9), %s647_s8, 256  }
 0x1b4   : > { %946 = vsyncadd (%p836_p9), %s647_s8, 4294967040  ;;  %s18_s23 = sadd.s32 1, %s969_s23   ;;  %s1153_s18 = smov %s953_s19 }
 0x1b5   : > { %p15_p10 = scmp.ge.s32.totalorder %s18_s23, 4   ;;  %s1154_s19 = smov %s957_s20 }
 0x1b6   : > { %s1155_s20 = smov %s1056_s6  ;;  %s1156_s21 = smov %s965_s22 }
 0x1b7   : > { %s1157_s22 = smov %s1159_s26  ;;  %17 = sbr.rel (!%p15_p10) target bundleno = 4 (0x4), region = 87 }
 0x1bc   :  { %653 = vsyncpa [#allocation4], 1 }
 0x1bd   :  { %655 = vsyncpa [#allocation4 + $0x1], 1 }

</bundles_post_ra>
